<compile_context>
chip_gen: v6e
topology: v6e:2x2x1
jax: 0.10.0
libtpu: 0.0.40
codegen_flags: <defaults>
</compile_context>

<pallas_src>
import jax
import jax.numpy as jnp
from jax.experimental import pallas as pl
from jax.experimental.pallas import tpu as pltpu


# ---------------------------------------------------------------------------
# Fused kernel: (conv_S + conv_T [+ shortcut]) as one MXU matmul + epilogue.
# ---------------------------------------------------------------------------
def _make_singleconv_kernel(add_identity: bool, has_shortcut: bool, act: bool):
    def kernel(*refs):
        if has_shortcut:
            x_ref, ws_ref, wt_ref, wsc_ref, b_ref, o_ref = refs
        else:
            x_ref, ws_ref, wt_ref, b_ref, o_ref = refs
            wsc_ref = None

        x = x_ref[0]                                    # (Cin, Ntile), lane-dense
        # Fold the pointwise convolutions into one weight — tiny VALU op on a
        # (Cout, Cin) tile, done in-kernel so x is read from HBM exactly once.
        w = ws_ref[...] + wt_ref[...]
        if wsc_ref is not None:
            w = w + wsc_ref[...]
        # Single MXU matmul: (Cout, Cin) @ (Cin, Ntile) -> (Cout, Ntile).
        y = jnp.dot(w, x, preferred_element_type=jnp.float32)
        y = y + b_ref[...]                              # (Cout, 1) broadcast
        if add_identity:                                # residual identity path
            y = y + x.astype(jnp.float32)
        if act:                                         # LeakyReLU(0.01)
            y = jnp.where(y >= 0, y, jnp.float32(0.01) * y)
        o_ref[0] = y.astype(o_ref.dtype)

    return kernel


def _pick_spatial_tile(n: int, cin: int, cout: int, itemsize: int) -> int:
    """Largest lane-dense (multiple of 128) tile along the flattened T*H*W axis
    that divides n and keeps the double-buffered working set comfortably inside
    scoped VMEM on every generation (v5e 16 MiB ... v7x 32 MiB)."""
    budget = 4 * 1024 * 1024                        # bytes per in+out block pair
    max_tile = max(128, budget // max(1, (cin + cout) * itemsize))
    if n <= max_tile:
        return n                                    # whole axis in one block
    tile = (max_tile // 128) * 128
    while tile >= 128:
        if n % tile == 0:
            return tile
        tile -= 128
    return n                                        # fallback: single full block


# ---------------------------------------------------------------------------
# Wrapper: x (b, Cin, t, h, w) -> (b, Cout, t, h, w)
# ---------------------------------------------------------------------------
def singleconv_forward(x, params, *, res=True, activation=False):
    b, cin, t, h, w = x.shape
    cout = params["w_s"].shape[0]
    add_identity = res and (cin == cout)
    has_shortcut = res and (cin != cout)
    n = t * h * w
    dt = x.dtype

    x_flat = x.reshape(b, cin, n)                   # free reshape (trailing dims)
    bias = (params["b_s"] + params["b_t"]).reshape(cout, 1).astype(jnp.float32)

    ntile = _pick_spatial_tile(n, cin, cout, jnp.dtype(dt).itemsize)
    grid = (b, n // ntile)

    w_spec = pl.BlockSpec((cout, cin), lambda i, j: (0, 0))
    in_specs = [pl.BlockSpec((1, cin, ntile), lambda i, j: (i, 0, j)),
                w_spec, w_spec]
    args = [x_flat, params["w_s"], params["w_t"]]
    if has_shortcut:
        in_specs.append(w_spec)
        args.append(params["w_sc"])
    in_specs.append(pl.BlockSpec((cout, 1), lambda i, j: (0, 0)))
    args.append(bias)

    out = pl.pallas_call(
        _make_singleconv_kernel(add_identity, has_shortcut, activation),
        out_shape=jax.ShapeDtypeStruct((b, cout, n), dt),
        grid=grid,
        in_specs=in_specs,
        out_specs=pl.BlockSpec((1, cout, ntile), lambda i, j: (i, 0, j)),
        compiler_params=pltpu.CompilerParams(
            dimension_semantics=("parallel", "parallel"),
            vmem_limit_bytes=32 * 1024 * 1024,
        ),
    )(*args)

    return out.reshape(b, cout, t, h, w)


# ---------------------------------------------------------------------------
# Pure-JAX reference mirroring SingleConv / LITFormerBlock (default args).
# ---------------------------------------------------------------------------
def reference(x, params, *, res=True, activation=False):
    cin = x.shape[1]
    cout = params["w_s"].shape[0]
    y = (jnp.einsum("bcthw,oc->bothw", x, params["w_s"])
         + params["b_s"][None, :, None, None, None])
    y = y + (jnp.einsum("bcthw,oc->bothw", x, params["w_t"])
             + params["b_t"][None, :, None, None, None])
    if res:
        if cin == cout:
            y = y + x
        else:
            y = y + jnp.einsum("bcthw,oc->bothw", x, params["w_sc"])
    if activation:
        y = jnp.where(y >= 0, y, 0.01 * y)
    return y


if __name__ == "__main__":
    def make_params(keys, cin, cout):
        p = dict(
            w_s=0.1 * jax.random.normal(keys[0], (cout, cin), jnp.float32),
            b_s=0.1 * jax.random.normal(keys[1], (cout,), jnp.float32),
            w_t=0.1 * jax.random.normal(keys[2], (cout, cin), jnp.float32),
            b_t=0.1 * jax.random.normal(keys[3], (cout,), jnp.float32),
        )
        if cin != cout:
            p["w_sc"] = 0.1 * jax.random.normal(keys[4], (cout, cin), jnp.float32)
        return p

    b, t, h, w = 2, 4, 16, 16

    # Case 1: SingleConv defaults — Cin == Cout, residual identity, no activation.
    cin = cout = 32
    k1 = jax.random.split(jax.random.PRNGKey(0), 6)
    x1 = jax.random.normal(k1[0], (b, cin, t, h, w), jnp.float32)
    p1 = make_params(k1[1:6], cin, cout)
    out1 = jax.block_until_ready(singleconv_forward(x1, p1, activation=False))
    ref1 = reference(x1, p1, activation=False)
    assert out1.shape == (b, cout, t, h, w), out1.shape
    assert jnp.allclose(out1, ref1, rtol=1e-3, atol=1e-3), \
        f"max abs err = {float(jnp.max(jnp.abs(out1 - ref1)))}"

    # Case 2: Cin != Cout (1x1x1 shortcut conv, no bias) + LeakyReLU activation.
    cin2, cout2 = 32, 64
    k2 = jax.random.split(jax.random.PRNGKey(1), 6)
    x2 = jax.random.normal(k2[0], (b, cin2, t, h, w), jnp.float32)
    p2 = make_params(k2[1:6], cin2, cout2)
    out2 = jax.block_until_ready(singleconv_forward(x2, p2, activation=True))
    ref2 = reference(x2, p2, activation=True)
    assert out2.shape == (b, cout2, t, h, w), out2.shape
    assert jnp.allclose(out2, ref2, rtol=1e-3, atol=1e-3), \
        f"max abs err = {float(jnp.max(jnp.abs(out2 - ref2)))}"

    print("KERNEL_OK")
</pallas_src>

<mosaic_0001>
module attributes {stable_mosaic.version = 11 : i64} {
  func.func @kernel(%arg0: i32, %arg1: i32, %arg2: memref<1x32x1024xf32, #tpu.memory_space<vmem>>, %arg3: memref<32x32xf32, #tpu.memory_space<vmem>>, %arg4: memref<32x32xf32, #tpu.memory_space<vmem>>, %arg5: memref<32x1xf32, #tpu.memory_space<vmem>>, %arg6: memref<1x32x1024xf32, #tpu.memory_space<vmem>>) attributes {dimension_semantics = [#tpu.dimension_semantics<parallel>, #tpu.dimension_semantics<parallel>], iteration_bounds = array<i64: 2, 1>, scalar_prefetch = 0 : i64, scratch_operands = 0 : i64, tpu.core_type = #tpu.core_type<tc>, window_params = [{transform_indices = @transform_0, window_bounds = array<i64: 1, 32, 1024>}, {pipeline_mode = #tpu.pipeline_mode<synchronous>, transform_indices = @transform_1, window_bounds = array<i64: 32, 32>}, {pipeline_mode = #tpu.pipeline_mode<synchronous>, transform_indices = @transform_2, window_bounds = array<i64: 32, 32>}, {pipeline_mode = #tpu.pipeline_mode<synchronous>, transform_indices = @transform_3, window_bounds = array<i64: 32, 1>}, {transform_indices = @transform_4, window_bounds = array<i64: 1, 32, 1024>}]} {
    %c0 = arith.constant 0 : index
    %c0_0 = arith.constant 0 : index
    %c0_1 = arith.constant 0 : index
    %0 = vector.load %arg2[%c0, %c0_0, %c0_1] : memref<1x32x1024xf32, #tpu.memory_space<vmem>>, vector<1x32x1024xf32>
    %1 = vector.shape_cast %0 : vector<1x32x1024xf32> to vector<32x1024xf32>
    %c0_2 = arith.constant 0 : index
    %c0_3 = arith.constant 0 : index
    %2 = vector.load %arg3[%c0_2, %c0_3] : memref<32x32xf32, #tpu.memory_space<vmem>>, vector<32x32xf32>
    %c0_4 = arith.constant 0 : index
    %c0_5 = arith.constant 0 : index
    %3 = vector.load %arg4[%c0_4, %c0_5] : memref<32x32xf32, #tpu.memory_space<vmem>>, vector<32x32xf32>
    %4 = arith.addf %2, %3 : vector<32x32xf32>
    %cst = arith.constant dense<0.000000e+00> : vector<32x1024xf32>
    %5 = tpu.matmul %4, %1, %cst {dimension_numbers = #tpu.dot_dimension_numbers<[1], [0], [0], [1], [0, 0, 1, 1], [], []>} : vector<32x32xf32>, vector<32x1024xf32>, vector<32x1024xf32> -> vector<32x1024xf32>
    %c0_6 = arith.constant 0 : index
    %c0_7 = arith.constant 0 : index
    %6 = vector.load %arg5[%c0_6, %c0_7] : memref<32x1xf32, #tpu.memory_space<vmem>>, vector<32x1xf32>
    %7 = vector.broadcast %6 : vector<32x1xf32> to vector<32x1024xf32>
    %8 = arith.addf %5, %7 : vector<32x1024xf32>
    %9 = arith.addf %8, %1 : vector<32x1024xf32>
    %c0_8 = arith.constant 0 : index
    %c0_9 = arith.constant 0 : index
    %c0_10 = arith.constant 0 : index
    %10 = vector.load %arg6[%c0_8, %c0_9, %c0_10] : memref<1x32x1024xf32, #tpu.memory_space<vmem>>, vector<1x32x1024xf32>
    %11 = vector.shape_cast %10 : vector<1x32x1024xf32> to vector<32x1024xf32>
    %12 = vector.shape_cast %9 : vector<32x1024xf32> to vector<1x32x1024xf32>
    tpu.vector_store %arg6[%c0_8, %c0_9, %c0_10], %12 {strides = array<i32>} : memref<1x32x1024xf32, #tpu.memory_space<vmem>>, vector<1x32x1024xf32>,
    return
  }
  func.func @transform_0(%arg0: i32, %arg1: i32) -> (i32, i32, i32) {
    %c0_i32 = arith.constant 0 : i32
    %c0_i32_0 = arith.constant 0 : i32
    return %arg0, %c0_i32, %arg1 : i32, i32, i32
  }
  func.func @transform_1(%arg0: i32, %arg1: i32) -> (i32, i32) {
    %c0_i32 = arith.constant 0 : i32
    %c0_i32_0 = arith.constant 0 : i32
    %c0_i32_1 = arith.constant 0 : i32
    return %c0_i32, %c0_i32_0 : i32, i32
  }
  func.func @transform_2(%arg0: i32, %arg1: i32) -> (i32, i32) {
    %c0_i32 = arith.constant 0 : i32
    %c0_i32_0 = arith.constant 0 : i32
    %c0_i32_1 = arith.constant 0 : i32
    return %c0_i32, %c0_i32_0 : i32, i32
  }
  func.func @transform_3(%arg0: i32, %arg1: i32) -> (i32, i32) {
    %c0_i32 = arith.constant 0 : i32
    %c0_i32_0 = arith.constant 0 : i32
    %c0_i32_1 = arith.constant 0 : i32
    return %c0_i32, %c0_i32_0 : i32, i32
  }
  func.func @transform_4(%arg0: i32, %arg1: i32) -> (i32, i32, i32) {
    %c0_i32 = arith.constant 0 : i32
    %c0_i32_0 = arith.constant 0 : i32
    return %arg0, %c0_i32, %arg1 : i32, i32, i32
  }
}

</mosaic_0001>

<bundles_post_ra>
// kernel: tpu_custom_call.1
= control target key start
LH: loop header
LB: loop body
LE: loop exit
PB: predicated region body
PF: predicated region fallthrough
CT: control target
= control target key end

     0   :  { %s1643_s0 = inlined_call_operand.hbm [shape: f32[2,32,1024], index: 0, kind: input, shape index: {}]   ;;  %s1644_s1 = inlined_call_operand.vmem [shape: f32[32,32], index: 1, kind: input, shape index: {}]   ;;  %s1645_s2 = inlined_call_operand.hbm [shape: f32[32,32], index: 2, kind: input, shape index: {}]   ;;  %s1646_s3 = inlined_call_operand.vmem [shape: f32[32,1], index: 3, kind: input, shape index: {}]   ;;  %s1647_s4 = inlined_call_operand.hbm [shape: f32[2,32,1024], index: 4, kind: output, shape index: {}]  }
   0x1   :  { %1649 = sst [smem:[#allocation11_spill]] %s1645_s2 }
   0x2   :  { %9 = vsyncpa [#allocation3], 0 }
   0x3   :  { %11 = vsyncpa [#allocation3 + $0x1], 0 }
   0x4   :  { %12 = vsyncpa [#allocation6], 0 }
   0x5   :  { %13 = vsyncpa [#allocation4], 0 }
   0x6   :  { %15 = vsyncpa [#allocation4 + $0x1], 0  ;;  %s1159_s15 = smov 0   ;;  %s1161_s16 = smov 0  }
   0x7   :  { %s1163_s17 = smov 0   ;;  %s1165_s18 = smov 0  }
   0x8   :  { %s1167_s19 = smov 0   ;;  %s1169_s20 = smov 0  }
   0x9 LB: > { %s865_s21 = sadd.s32 4294967295, %s1121_s20   ;;  %s866_s22 = sadd.s32 4294967294, %s1121_s20   ;;  %s1121_s20 = sphi %s1169_s20, %s21_s20   ;;  %s1117_s19 = sphi %s1167_s19, %s1667_s19   ;;  %s1113_s18 = sphi %s1165_s18, %s1666_s18   ;;  %s1109_s17 = sphi %s1163_s17, %s1665_s17   ;;  %s1105_s16 = sphi %s1161_s16, %s1664_s16   ;;  %s1101_s15 = sphi %s1159_s15, %s1663_s15  }
   0xa   : > { %p55_p0 = scmp.ne.s32.totalorder %s1105_s16, %s1101_s15  ;;  %p1193_p1 = scmp.eq.s32.totalorder %s865_s21, 0 }
   0xb   : > { %p1197_p2 = scmp.eq.s32.totalorder %s865_s21, 1  ;;  %p150_p3 = scmp.eq.s32.totalorder %s866_s22, 1 }
   0xc   : > { %p1203_p4 = por %p1193_p1, %p55_p0  ;;  %p867_p5 = scmp.ge.s32.totalorder %s1121_s20, 1 }
   0xd   : > { %p1208_p6 = por %p150_p3, %p55_p0  ;;  %p157_p7 = scmp.lt.s32.totalorder %s1121_s20, 3 }
   0xe   : > { %s1652_s25 = scalar_select %p1203_p4, 1, 0 }
   0xf   : > { %s1653_s26 = scalar_select %p1208_p6, 1, 0 }
  0x10   : > { %p1213_p8 = pnand %p867_p5, %p157_p7  ;;  %s1123_s28 = smov [#allocation5]  }
  0x11   : > { %s172_s29 = sshll.u32 %s1123_s28, 4  ;;  %s33_s5 = sadd.s32 1, %s1117_s19  ;;  %s173_s29 = int_to_ptr.vmem [resolvable:$true] %s172_s29 }
  0x12   : > { %p908_p9 = pneg %p1213_p8  ;;  %s994_s6 = scalar_lea.vmem %s173_s29, 512 }
  0x13   : > { %p995_p13 = scmp.ne.s32.totalorder %s173_s29, %s994_s6  ;;  %p1002_p5 = scmp.lt.s32.totalorder %s173_s29, %s173_s29 }
  0x14   : > { %p1222_p11 = pnand %p908_p9, %p1193_p1  ;;  %p1003_p7 = scmp.lt.s32.totalorder %s994_s6, %s994_s6 }
  0x16   : > { %p985_p12 = pneg %p1222_p11  ;;  %p1004_p6 = por %p1003_p7, %p1002_p5 }
  0x18   : > { %p997_p0 = pnand %p995_p13, %p985_p12 }
  0x1a   : > { %p998_p3 = pneg %p997_p0 }
  0x1c   : > { %p1005_p4 = pnand %p1004_p6, %p998_p3 }
  0x1e   : > { %1008 = shalt.err (!%p1005_p4)
}
  0x1f   : > { %s1124_s7 = smov 128   ;;  %s1125_s8 = smov 8  }
  0x20   : > { %s1656_s2 = sld [smem:[#allocation11_spill]]  ;;  %p35_p6 = scmp.ge.s32.totalorder %s33_s5, 2 }
  0x21   : > { %s42_s11 = sadd.s32 1, %s1109_s17  ;;  %p49_p4 = scmp.ne.s32.totalorder %s1109_s17, %s1105_s16 }
  0x22   : > { %p50_p9 = scmp.eq.s32.totalorder %s1121_s20, 0  ;;  %s1669_s5 = smov (%p35_p6, %s33_s5), 0 }
  0x23   : > { %p1246_p13 = por %p1197_p2, %p49_p4  ;;  %s37_s14 = ssub.s32 %s1117_s19, %s1669_s5 }
  0x24   : > { %p1240_p12 = por %p50_p9, %p49_p4  ;;  %p921_p0 = scmp.lt.s32.totalorder %s1121_s20, 2 }
  0x25   : > { %s189_s21 = sand.u32 1, %s1109_s17  }
  0x26   : > { %911 = dma.hbm_to_vmem [thread:$0]  (!%p1222_p11), %s1656_s2, 512, %s173_s29, [#allocation6], %s1124_s7, %s1124_s7, %s1125_s8  }
  0x27   : > { %p40_p11 = scmp.eq.s32.totalorder %s37_s14, 0  ;;  %s870_s22 = sshll.u32 %s189_s21, 8 }
  0x28   : > { %s898_s29 = sshll.u32 %s1117_s19, 12  ;;  %s193_s8 = scalar_lea.vmem [#allocation2], %s870_s22 }
  0x29   : > { %s1255_s28 = scalar_select %p40_p11, %s1109_s17, %s42_s11  }
  0x2a   : > { %s201_s7 = scalar_lea.hbm %s1643_s0, %s898_s29  ;;  %s202_s9 = sshll.u32 %s193_s8, 4  ;;  %s203_s9 = int_to_ptr.vmem [resolvable:$true] %s202_s9 }
  0x2b   : > { %p1263_p2 = pnand %p921_p0, %p1240_p12  ;;  %s190_s10 = scalar_lea.sflag [#allocation3], %s189_s21 }
  0x2c   : > { %s1022_s14 = scalar_lea.vmem %s203_s9, 4096  ;;  %s1126_s11 = smov [#allocation2]  }
  0x2d   : > { %p1011_p3 = pneg %p1263_p2  ;;  %p1023_p5 = scmp.ne.s32.totalorder %s203_s9, %s1022_s14 }
  0x2e   : > { %s1027_s2 = sshll.u32 %s1126_s11, 4  ;;  %s1028_s2 = int_to_ptr.vmem [resolvable:$false] %s1027_s2 }
  0x2f   : > { %p1025_p7 = pnand %p1023_p5, %p1011_p3  ;;  %s1029_s29 = scalar_lea.vmem %s1028_s2, 8192 }
  0x30   : > { %p1030_p4 = scmp.lt.s32.totalorder %s203_s9, %s1028_s2  ;;  %p1031_p9 = scmp.lt.s32.totalorder %s1029_s29, %s1022_s14 }
  0x31   : > { %p1026_p6 = pneg %p1025_p7 }
  0x32   : > { %p1032_p11 = por %p1031_p9, %p1030_p4 }
  0x34   : > { %p1033_p10 = pnand %p1032_p11, %p1026_p6 }
  0x36   : > { %1036 = shalt.err (!%p1033_p10)
}
  0x37   : > { %s1127_s12 = smov 1024   ;;  %s1128_s22 = smov 64  }
  0x38   : > { %915 = dma.hbm_to_vmem [thread:$0]  (!%p1263_p2), %s201_s7, 4096, %s203_s9, %s190_s10, %s1127_s12, %s1127_s12, %s1128_s22  }
  0x39   : > { %214 = sbr.rel (%p1213_p8) target bundleno = 317 (0x13d), region = 36  ;;  %s1274_s21 = sand.u32 (!%p1213_p8), 1, %s1105_s16  }
  0x3a   : > { %s874_s2 = sshll.u32 (!%p1213_p8), %s1274_s21, 8  ;;  %s217_s30 = scalar_lea.sflag (!%p1213_p8), [#allocation3], %s1274_s21 }
  0x3b   : > { %s1280_s6 = scalar_lea.vmem (!%p1213_p8), [#allocation2], %s874_s2  ;;  %p1660_p10 = scmp.ne.s32.totalorder (!%p1213_p8), %s1652_s25, 0 }
  0x3e   : > { %1088 = dma.done.wait (%p1660_p10), %s217_s30, 4096  }
  0x3f   : > { %1090 = vsyncadd (%p1660_p10), %s217_s30, 4294963200 }
  0x40   : > { %1092 = dma.done.wait (%p1193_p1), [#allocation6], 512  }
  0x41   : > { %1094 = vsyncadd (%p1193_p1), [#allocation6], 4294966784  ;;  %v1129_v0 = vmov 0.0   ;;  %v1130_v1 = vmov 0   ;;  %v1293_v2 = vld [vmem:[%s1280_s6 + $0xc8] sm:$0xff]  ;;  %v1296_v3 = vld [vmem:[%s1280_s6 + $0xd8] sm:$0xff] }
  0x42   : > { %396 = vmatprep.mubr.f32.mxu0 %v1129_v0  ;;  %485 = vmatprep.mubr.f32.mxu1 %v1129_v0  ;;  %v1299_v4 = vld [vmem:[%s1280_s6 + $0xc0] sm:$0xff]  ;;  %v1304_v5 = vld [vmem:[%s1280_s6 + $0xd0] sm:$0xff]  ;;  %v1307_v6 = vld [vmem:[%s1280_s6 + $0x88] sm:$0xff]  ;;  %vm319_vm0 = vcmask 261120   ;;  %s1494_s25 = scalar_lea.vmem [#allocation7], %s874_s2  ;;  %s899_s2 = sshll.u32 %s1113_s18, 12 }
  0x43   : > { %981 = vset.pattern.permute.xlu0 %v1130_v1  ;;  %982 = vset.pattern.permute.xlu1 %v1130_v1  ;;  %v1310_v7 = vld [vmem:[%s1280_s6 + $0x98] sm:$0xff]  ;;  %v1315_v8 = vld [vmem:[%s1280_s6 + $0x80] sm:$0xff]  ;;  %v1318_v9 = vld [vmem:[%s1280_s6 + $0x90] sm:$0xff]  ;;  %s768_s27 = sshll.u32 %s1494_s25, 4  ;;  %s1587_s18 = scalar_lea.hbm %s1647_s4, %s899_s2  ;;  %s1589_s27 = int_to_ptr.vmem [resolvable:$true] %s768_s27 }
  0x44   : > { %356 = vmatprep.subr.mxu0 %v1293_v2  ;;  %445 = vmatprep.subr.mxu1 %v1296_v3  ;;  %v1321_v10 = vld [vmem:[%s1280_s6 + $0x48] sm:$0xff]  ;;  %v1326_v11 = vld [vmem:[%s1280_s6 + $0x58] sm:$0xff]  ;;  %v1329_v12 = vld [vmem:[%s1280_s6 + $0x40] sm:$0xff]  ;;  %s753_s9 = scalar_lea.sflag [#allocation4], %s1274_s21  ;;  %s1037_s24 = scalar_lea.vmem %s1589_s27, 4096 }
  0x45   : > { %357 = vmatpush1.msra.mxu0 %v1299_v4  ;;  %446 = vmatpush1.msra.mxu1 %v1304_v5  ;;  %v1332_v13 = vld [vmem:[%s1280_s6 + $0x50] sm:$0xff]  ;;  %v1337_v14 = vld [vmem:[%s1280_s6 + $0x8] sm:$0xff]  ;;  %v1340_v15 = vld [vmem:[%s1280_s6 + $0x18] sm:$0xff]  ;;  %p1038_p1 = scmp.ne.s32.totalorder %s1589_s27, %s1037_s24  ;;  %s1131_s10 = smov [#allocation7]  }
  0x46   : > { %358 = vmatprep.subr.mxu0 %v1307_v6  ;;  %447 = vmatprep.subr.mxu1 %v1310_v7  ;;  %v1343_v16 = vld [vmem:[%s1280_s6] sm:$0xff]  ;;  %v1348_v17 = vld [vmem:[%s1280_s6 + $0x10] sm:$0xff]  ;;  %v1358_v21 = vld [vmem:[%s1280_s6 + $0xe8] sm:$0xff]  ;;  %s1041_s14 = sshll.u32 %s1131_s10, 4  ;;  %s1042_s14 = int_to_ptr.vmem [resolvable:$false] %s1041_s14 }
  0x47   : > { %359 = vmatpush1.msra.mxu0 %v1315_v8  ;;  %448 = vmatpush1.msra.mxu1 %v1318_v9  ;;  %v283_v18 = vld [vmem:[%s1644_s1] sm:$0xff]  ;;  %v1363_v22 = vld [vmem:[%s1280_s6 + $0xf8] sm:$0xff]  ;;  %v284_v23 = vld [vmem:[%s1644_s1 + $0x8] sm:$0xff]  ;;  %p1039_p8 = pnand %p1038_p1, %p1246_p13  ;;  %s1043_s11 = scalar_lea.vmem %s1042_s14, 8192 }
  0x48   : > { %360 = vmatprep.subr.mxu0 %v1321_v10  ;;  %449 = vmatprep.subr.mxu1 %v1326_v11  ;;  %v287_v19 = vld [vmem:[#allocation5] sm:$0xff]  ;;  %v288_v24 = vld [vmem:[#allocation5 + $0x8] sm:$0xff]  ;;  %v1374_v26 = vld [vmem:[%s1280_s6 + $0xf0] sm:$0xff]  ;;  %p1044_p0 = scmp.lt.s32.totalorder %s1589_s27, %s1042_s14  ;;  %p1045_p2 = scmp.lt.s32.totalorder %s1043_s11, %s1037_s24 }
  0x49   : > { %361 = vmatpush1.msra.mxu0 %v1329_v12  ;;  %450 = vmatpush1.msra.mxu1 %v1332_v13  ;;  %v1355_v20 = vadd.f32 %v287_v19, %v283_v18  ;;  %v1371_v25 = vld [vmem:[%s1280_s6 + $0xe0] sm:$0xff]  ;;  %v292_v27 = vadd.f32 %v288_v24, %v284_v23  ;;  %v285_v28 = vld [vmem:[%s1644_s1 + $0x10] sm:$0xff]  ;;  %v1388_v30 = vld [vmem:[%s1280_s6 + $0xa8] sm:$0xff]  ;;  %p1040_p12 = pneg %p1039_p8 }
  0x4a   : > { %362 = vmatprep.subr.mxu0 %v1337_v14  ;;  %451 = vmatprep.subr.mxu1 %v1340_v15  ;;  %v289_v29 = vld [vmem:[#allocation5 + $0x10] sm:$0xff]  ;;  %v1391_v31 = vld [vmem:[%s1280_s6 + $0xb8] sm:$0xff]  ;;  %v1396_v32 = vld [vmem:[%s1280_s6 + $0xa0] sm:$0xff]  ;;  %p1046_p3 = por %p1045_p2, %p1044_p0 }
  0x4b   : > { %363 = vmatpush1.msra.mxu0 %v1343_v16  ;;  %452 = vmatpush1.msra.mxu1 %v1348_v17  ;;  %v1399_v33 = vld [vmem:[%s1280_s6 + $0xb0] sm:$0xff]  ;;  %v293_v34 = vadd.f32 %v289_v29, %v285_v28  ;;  %v286_v35 = vld [vmem:[%s1644_s1 + $0x18] sm:$0xff]  ;;  %v1411_v37 = vld [vmem:[%s1280_s6 + $0x68] sm:$0xff] }
  0x4c   : > { %877 = vmatmul.mubr.msk.f32.vlgmr.msra.gmra.mxu0 %vm319_vm0, %v1355_v20  ;;  %881 = vmatmul.mubr.msk.f32.vlgmr.msra.gmra.mxu1 %vm319_vm0, %v1355_v20  ;;  %v290_v36 = vld [vmem:[#allocation5 + $0x18] sm:$0xff]  ;;  %v1419_v39 = vld [vmem:[%s1280_s6 + $0x60] sm:$0xff]  ;;  %v1422_v40 = vld [vmem:[%s1280_s6 + $0x70] sm:$0xff]  ;;  %p1047_p5 = pnand %p1046_p3, %p1040_p12 }
  0x4d   : > { %534 = vmatprep.subr.mxu0 %v1358_v21  ;;  %623 = vmatprep.subr.mxu1 %v1363_v22  ;;  %v1414_v38 = vld [vmem:[%s1280_s6 + $0x78] sm:$0xff]  ;;  %v294_v41 = vadd.f32 %v290_v36, %v286_v35  ;;  %v1431_v42 = vld [vmem:[%s1280_s6 + $0x28] sm:$0xff]  ;;  %v1439_v44 = vld [vmem:[%s1280_s6 + $0x20] sm:$0xff] }
  0x4e   : > { %535 = vmatpush1.msra.mxu0 %v1371_v25  ;;  %624 = vmatpush1.msra.mxu1 %v1374_v26  ;;  %v1434_v43 = vld [vmem:[%s1280_s6 + $0x38] sm:$0xff]  ;;  %v1442_v45 = vld [vmem:[%s1280_s6 + $0x30] sm:$0xff]  ;;  %v295_v46 = vld [vmem:[%s1646_s3] sm:$0xff] }
  0x4f   : > { %402 = vmatprep.mubr.f32.mxu0 %v1129_v0  ;;  %491 = vmatprep.mubr.f32.mxu1 %v1129_v0  ;;  %v297_v47 = vld [vmem:[%s1646_s3 + $0x10] sm:$0xff]  ;;  %v296_v48 = vld [vmem:[%s1646_s3 + $0x8] sm:$0xff]  ;;  %v298_v49 = vld [vmem:[%s1646_s3 + $0x18] sm:$0xff] }
  0x50   : > { %878 = vmatmul.mubr.msk.f32.gmra.mxu0 %vm319_vm0, %v292_v27  ;;  %882 = vmatmul.mubr.msk.f32.gmra.mxu1 %vm319_vm0, %v292_v27 }
  0x51   : > { %536 = vmatprep.subr.mxu0 %v1388_v30  ;;  %625 = vmatprep.subr.mxu1 %v1391_v31 }
  0x52   : > { %537 = vmatpush1.msra.mxu0 %v1396_v32  ;;  %626 = vmatpush1.msra.mxu1 %v1399_v33 }
  0x53   : > { %408 = vmatprep.mubr.f32.mxu0 %v1129_v0  ;;  %497 = vmatprep.mubr.f32.mxu1 %v1129_v0 }
  0x54   : > { %879 = vmatmul.mubr.msk.f32.gmra.mxu0 %vm319_vm0, %v293_v34  ;;  %883 = vmatmul.mubr.msk.f32.gmra.mxu1 %vm319_vm0, %v293_v34 }
  0x55   : > { %538 = vmatprep.subr.mxu0 %v1411_v37  ;;  %627 = vmatprep.subr.mxu1 %v1414_v38 }
  0x56   : > { %539 = vmatpush1.msra.mxu0 %v1419_v39  ;;  %628 = vmatpush1.msra.mxu1 %v1422_v40 }
  0x57   : > { %414 = vmatprep.mubr.f32.mxu0 %v1129_v0  ;;  %503 = vmatprep.mubr.f32.mxu1 %v1129_v0 }
  0x58   : > { %880 = vmatmul.mubr.msk.f32.gmra.mxu0 %vm319_vm0, %v294_v41  ;;  %884 = vmatmul.mubr.msk.f32.gmra.mxu1 %vm319_vm0, %v294_v41 }
  0x59   : > { %540 = vmatprep.subr.mxu0 %v1431_v42  ;;  %629 = vmatprep.subr.mxu1 %v1434_v43 }
  0x5a   : > { %541 = vmatpush1.msra.mxu0 %v1439_v44  ;;  %630 = vmatpush1.msra.mxu1 %v1442_v45 }
  0x5b   : > { %574 = vmatprep.mubr.f32.mxu0 %v1129_v0  ;;  %663 = vmatprep.mubr.f32.mxu1 %v1129_v0 }
  0x5c   : > { %885 = vmatmul.mubr.msk.f32.vlgmr.msra.gmra.mxu0 %vm319_vm0, %v1355_v20  ;;  %889 = vmatmul.mubr.msk.f32.vlgmr.msra.gmra.mxu1 %vm319_vm0, %v1355_v20 }
  0x5d   : > { %580 = vmatprep.mubr.f32.mxu0 %v1129_v0  ;;  %669 = vmatprep.mubr.f32.mxu1 %v1129_v0 }
  0x5e   : > { %301 = vperm.xlu0 %981, %v295_v46   ;;  %311 = vperm.xlu1 %982, %v297_v47  }
  0x60   : > { %886 = vmatmul.mubr.msk.f32.gmra.mxu0 %vm319_vm0, %v292_v27  ;;  %890 = vmatmul.mubr.msk.f32.gmra.mxu1 %vm319_vm0, %v292_v27 }
  0x61   : > { %586 = vmatprep.mubr.f32.mxu0 %v1129_v0  ;;  %675 = vmatprep.mubr.f32.mxu1 %v1129_v0 }
  0x62   : > { %306 = vperm.xlu0 %981, %v296_v48   ;;  %316 = vperm.xlu1 %982, %v298_v49  }
  0x64   : > { %887 = vmatmul.mubr.msk.f32.gmra.mxu0 %vm319_vm0, %v293_v34  ;;  %891 = vmatmul.mubr.msk.f32.gmra.mxu1 %vm319_vm0, %v293_v34 }
  0x65   : > { %592 = vmatprep.mubr.f32.mxu0 %v1129_v0  ;;  %681 = vmatprep.mubr.f32.mxu1 %v1129_v0 }
  0x68   : > { %888 = vmatmul.mubr.msk.f32.gmra.mxu0 %vm319_vm0, %v294_v41  ;;  %892 = vmatmul.mubr.msk.f32.gmra.mxu1 %vm319_vm0, %v294_v41 }
  0xd9   : > { %v1480_v50 = vpop.permute.xlu0 %301  ;;  %v1490_v62 = vpop.permute.xlu1 %311 }
  0xdd   : > { %v1484_v55 = vpop.permute.xlu0 %306  ;;  %v1514_v36 = vpop.permute.xlu1 %316 }
 0x10c   : > { %v398_v51 = vpop.f32.mrf.mxu0  ;;  %v487_v52 = vpop.f32.mrf.mxu1 }
 0x10d   : > { %v399_v53 = vadd.f32 %v398_v51, %v1480_v50  ;;  %v488_v54 = vadd.f32 %v487_v52, %v1480_v50 }
 0x10e   : > { %v400_v56 = vpop.f32.mrf.mxu0  ;;  %v489_v57 = vpop.f32.mrf.mxu1 }
 0x10f   : > { %v688_v58 = vadd.f32 %v399_v53, %v1343_v16  ;;  %v690_v59 = vadd.f32 %v488_v54, %v1348_v17  ;;  %v401_v60 = vadd.f32 %v400_v56, %v1480_v50  ;;  %v490_v61 = vadd.f32 %v489_v57, %v1480_v50 }
 0x110   : > { %v404_v63 = vpop.f32.mrf.mxu0  ;;  %v493_v0 = vpop.f32.mrf.mxu1 }
 0x111   : > { %720 = vst [vmem:[%s1494_s25] sm:$0xff] %v688_v58  ;;  %722 = vst [vmem:[%s1494_s25 + $0x10] sm:$0xff] %v690_v59  ;;  %v689_v1 = vadd.f32 %v401_v60, %v1337_v14  ;;  %v691_v16 = vadd.f32 %v490_v61, %v1340_v15  ;;  %v405_v17 = vadd.f32 %v404_v63, %v1484_v55 }
 0x112   : > { %v494_v18 = vadd.f32 %v493_v0, %v1484_v55  ;;  %v406_v19 = vpop.f32.mrf.mxu0  ;;  %v495_v20 = vpop.f32.mrf.mxu1 }
 0x113   : > { %721 = vst [vmem:[%s1494_s25 + $0x8] sm:$0xff] %v689_v1  ;;  %723 = vst [vmem:[%s1494_s25 + $0x18] sm:$0xff] %v691_v16  ;;  %v696_v23 = vadd.f32 %v405_v17, %v1329_v12  ;;  %v407_v27 = vadd.f32 %v406_v19, %v1484_v55  ;;  %v496_v14 = vadd.f32 %v495_v20, %v1484_v55 }
 0x114   : > { %v698_v24 = vadd.f32 %v494_v18, %v1332_v13  ;;  %v410_v28 = vpop.f32.mrf.mxu0  ;;  %v499_v15 = vpop.f32.mrf.mxu1 }
 0x115   : > { %728 = vst [vmem:[%s1494_s25 + $0x40] sm:$0xff] %v696_v23  ;;  %v697_v29 = vadd.f32 %v407_v27, %v1321_v10  ;;  %v699_v34 = vadd.f32 %v496_v14, %v1326_v11  ;;  %v411_v35 = vadd.f32 %v410_v28, %v1490_v62  ;;  %v500_v12 = vadd.f32 %v499_v15, %v1490_v62 }
 0x116   : > { %730 = vst [vmem:[%s1494_s25 + $0x50] sm:$0xff] %v698_v24  ;;  %v412_v13 = vpop.f32.mrf.mxu0  ;;  %v501_v41 = vpop.f32.mrf.mxu1 }
 0x117   : > { %729 = vst [vmem:[%s1494_s25 + $0x48] sm:$0xff] %v697_v29  ;;  %731 = vst [vmem:[%s1494_s25 + $0x58] sm:$0xff] %v699_v34  ;;  %v704_v46 = vadd.f32 %v411_v35, %v1315_v8  ;;  %v706_v47 = vadd.f32 %v500_v12, %v1318_v9  ;;  %v413_v10 = vadd.f32 %v412_v13, %v1490_v62 }
 0x118   : > { %v502_v11 = vadd.f32 %v501_v41, %v1490_v62  ;;  %v416_v48 = vpop.f32.mrf.mxu0  ;;  %v505_v49 = vpop.f32.mrf.mxu1 }
 0x119   : > { %736 = vst [vmem:[%s1494_s25 + $0x80] sm:$0xff] %v704_v46  ;;  %738 = vst [vmem:[%s1494_s25 + $0x90] sm:$0xff] %v706_v47  ;;  %v705_v51 = vadd.f32 %v413_v10, %v1307_v6  ;;  %v417_v53 = vadd.f32 %v416_v48, %v1514_v36  ;;  %v506_v8 = vadd.f32 %v505_v49, %v1514_v36 }
 0x11a   : > { %v707_v52 = vadd.f32 %v502_v11, %v1310_v7  ;;  %v418_v54 = vpop.f32.mrf.mxu0  ;;  %v507_v9 = vpop.f32.mrf.mxu1 }
 0x11b   : > { %737 = vst [vmem:[%s1494_s25 + $0x88] sm:$0xff] %v705_v51  ;;  %v712_v56 = vadd.f32 %v417_v53, %v1299_v4  ;;  %v714_v57 = vadd.f32 %v506_v8, %v1304_v5  ;;  %v419_v58 = vadd.f32 %v418_v54, %v1514_v36  ;;  %v508_v6 = vadd.f32 %v507_v9, %v1514_v36 }
 0x11c   : > { %739 = vst [vmem:[%s1494_s25 + $0x98] sm:$0xff] %v707_v52  ;;  %v576_v59 = vpop.f32.mrf.mxu0  ;;  %v665_v7 = vpop.f32.mrf.mxu1 }
 0x11d   : > { %744 = vst [vmem:[%s1494_s25 + $0xc0] sm:$0xff] %v712_v56  ;;  %746 = vst [vmem:[%s1494_s25 + $0xd0] sm:$0xff] %v714_v57  ;;  %v713_v60 = vadd.f32 %v419_v58, %v1293_v2  ;;  %v715_v61 = vadd.f32 %v508_v6, %v1296_v3  ;;  %v577_v63 = vadd.f32 %v576_v59, %v1480_v50 }
 0x11e   : > { %v666_v4 = vadd.f32 %v665_v7, %v1480_v50  ;;  %v578_v0 = vpop.f32.mrf.mxu0  ;;  %v667_v5 = vpop.f32.mrf.mxu1 }
 0x11f   : > { %745 = vst [vmem:[%s1494_s25 + $0xc8] sm:$0xff] %v713_v60  ;;  %747 = vst [vmem:[%s1494_s25 + $0xd8] sm:$0xff] %v715_v61  ;;  %v692_v1 = vadd.f32 %v577_v63, %v1439_v44  ;;  %v579_v17 = vadd.f32 %v578_v0, %v1480_v50  ;;  %v668_v2 = vadd.f32 %v667_v5, %v1480_v50 }
 0x120   : > { %v694_v16 = vadd.f32 %v666_v4, %v1442_v45  ;;  %v582_v18 = vpop.f32.mrf.mxu0  ;;  %v671_v3 = vpop.f32.mrf.mxu1 }
 0x121   : > { %724 = vst [vmem:[%s1494_s25 + $0x20] sm:$0xff] %v692_v1  ;;  %v693_v19 = vadd.f32 %v579_v17, %v1431_v42  ;;  %v695_v20 = vadd.f32 %v668_v2, %v1434_v43  ;;  %v583_v23 = vadd.f32 %v582_v18, %v1484_v55  ;;  %v672_v44 = vadd.f32 %v671_v3, %v1484_v55 }
 0x122   : > { %726 = vst [vmem:[%s1494_s25 + $0x30] sm:$0xff] %v694_v16  ;;  %v584_v24 = vpop.f32.mrf.mxu0  ;;  %v673_v45 = vpop.f32.mrf.mxu1 }
 0x123   : > { %725 = vst [vmem:[%s1494_s25 + $0x28] sm:$0xff] %v693_v19  ;;  %727 = vst [vmem:[%s1494_s25 + $0x38] sm:$0xff] %v695_v20  ;;  %v700_v50 = vadd.f32 %v583_v23, %v1419_v39  ;;  %v702_v27 = vadd.f32 %v672_v44, %v1422_v40  ;;  %v585_v14 = vadd.f32 %v584_v24, %v1484_v55 }
 0x124   : > { %v674_v42 = vadd.f32 %v673_v45, %v1484_v55  ;;  %v588_v28 = vpop.f32.mrf.mxu0  ;;  %v677_v43 = vpop.f32.mrf.mxu1 }
 0x125   : > { %732 = vst [vmem:[%s1494_s25 + $0x60] sm:$0xff] %v700_v50  ;;  %734 = vst [vmem:[%s1494_s25 + $0x70] sm:$0xff] %v702_v27  ;;  %v701_v15 = vadd.f32 %v585_v14, %v1411_v37  ;;  %v589_v34 = vadd.f32 %v588_v28, %v1490_v62  ;;  %v678_v39 = vadd.f32 %v677_v43, %v1490_v62 }
 0x126   : > { %v703_v29 = vadd.f32 %v674_v42, %v1414_v38  ;;  %v590_v35 = vpop.f32.mrf.mxu0  ;;  %v679_v40 = vpop.f32.mrf.mxu1 }
 0x127   : > { %733 = vst [vmem:[%s1494_s25 + $0x68] sm:$0xff] %v701_v15  ;;  %v708_v55 = vadd.f32 %v589_v34, %v1396_v32  ;;  %v710_v12 = vadd.f32 %v678_v39, %v1399_v33  ;;  %v591_v37 = vadd.f32 %v590_v35, %v1490_v62  ;;  %v680_v38 = vadd.f32 %v679_v40, %v1490_v62 }
 0x128   : > { %735 = vst [vmem:[%s1494_s25 + $0x78] sm:$0xff] %v703_v29  ;;  %v594_v13 = vpop.f32.mrf.mxu0  ;;  %v683_v41 = vpop.f32.mrf.mxu1 }
 0x129   : > { %740 = vst [vmem:[%s1494_s25 + $0xa0] sm:$0xff] %v708_v55  ;;  %742 = vst [vmem:[%s1494_s25 + $0xb0] sm:$0xff] %v710_v12  ;;  %v709_v46 = vadd.f32 %v591_v37, %v1388_v30  ;;  %v711_v47 = vadd.f32 %v680_v38, %v1391_v31  ;;  %v595_v32 = vadd.f32 %v594_v13, %v1514_v36 }
 0x12a   : > { %v684_v10 = vadd.f32 %v683_v41, %v1514_v36  ;;  %v596_v33 = vpop.f32.mrf.mxu0  ;;  %v685_v62 = vpop.f32.mrf.mxu1 }
 0x12b   : > { %741 = vst [vmem:[%s1494_s25 + $0xa8] sm:$0xff] %v709_v46  ;;  %743 = vst [vmem:[%s1494_s25 + $0xb8] sm:$0xff] %v711_v47  ;;  %v716_v30 = vadd.f32 %v595_v32, %v1371_v25  ;;  %v597_v31 = vadd.f32 %v596_v33, %v1514_v36  ;;  %v686_v48 = vadd.f32 %v685_v62, %v1514_v36 }
 0x12c   : > { %v718_v11 = vadd.f32 %v684_v10, %v1374_v26 }
 0x12d   : > { %748 = vst [vmem:[%s1494_s25 + $0xe0] sm:$0xff] %v716_v30  ;;  %v717_v25 = vadd.f32 %v597_v31, %v1358_v21  ;;  %v719_v26 = vadd.f32 %v686_v48, %v1363_v22 }
 0x12e   : > { %750 = vst [vmem:[%s1494_s25 + $0xf0] sm:$0xff] %v718_v11 }
 0x12f   : > { %749 = vst [vmem:[%s1494_s25 + $0xe8] sm:$0xff] %v717_v25  ;;  %751 = vst [vmem:[%s1494_s25 + $0xf8] sm:$0xff] %v719_v26 }
 0x130   : > { %1050 = shalt.err (!%p1047_p5)
}
 0x131   : > { %s1051_s29 = scalar_lea.hbm %s1587_s18, 4096  ;;  %s1055_s30 = scalar_lea.hbm %s1647_s4, 8192 }
 0x132   : > { %p1052_p7 = scmp.ne.s32.totalorder %s1587_s18, %s1051_s29  ;;  %p1056_p9 = scmp.lt.s32.totalorder %s1587_s18, %s1647_s4 }
 0x133   : > { %p1057_p11 = scmp.lt.s32.totalorder %s1055_s30, %s1051_s29 }
 0x134   : > { %p1053_p6 = pnand %p1052_p7, %p1246_p13 }
 0x135   : > { %p1058_p10 = por %p1057_p11, %p1056_p9 }
 0x136   : > { %p1054_p4 = pneg %p1053_p6 }
 0x138   : > { %p1059_p1 = pnand %p1058_p10, %p1054_p4 }
 0x13a   : > { %1062 = shalt.err (!%p1059_p1)
}
 0x13b   : > { %s1132_s25 = smov 1024   ;;  %s1133_s2 = smov 64  }
 0x13c   : > { %906 = dma.vmem_to_hbm [thread:$0]  (%p1246_p13), %s1589_s27, 4096, %s1587_s18, %s753_s9, %s1132_s25, %s1132_s25, %s1133_s2  }
 0x13d PF: > { %s783_s7 = sand.u32 1, %s1101_s15   ;;  %p1661_p8 = scmp.ne.s32.totalorder %s1653_s26, 0 }
 0x13e   : > { %p1662_p12 = scmp.ge.s32.totalorder %s1121_s20, 2  ;;  %s784_s8 = scalar_lea.sflag [#allocation4], %s783_s7 }
 0x140   : > { %p917_p0 = pnand %p1662_p12, %p1661_p8 }
 0x142   : > { %p918_p2 = pneg %p917_p0 }
 0x144   : > { %1096 = dma.done.wait (%p918_p2), %s784_s8, 4096  }
 0x145   : > { %1098 = vsyncadd (%p918_p2), %s784_s8, 4294963200  ;;  %s21_s20 = sadd.s32 1, %s1121_s20   ;;  %s1663_s15 = smov %s1105_s16 }
 0x146   : > { %p18_p3 = scmp.ge.s32.totalorder %s21_s20, 4   ;;  %s1664_s16 = smov %s1109_s17 }
 0x147   : > { %s1665_s17 = smov %s1255_s28  ;;  %s1666_s18 = smov %s1117_s19 }
 0x148   : > { %s1667_s19 = smov %s1669_s5  ;;  %20 = sbr.rel (!%p18_p3) target bundleno = 9 (0x9), region = 85 }
 0x14d   :  { %789 = vsyncpa [#allocation3], 1 }
 0x14e   :  { %791 = vsyncpa [#allocation3 + $0x1], 1 }
 0x14f   :  { %792 = vsyncpa [#allocation6], 1 }
 0x150   :  { %793 = vsyncpa [#allocation4], 1 }
 0x151   :  { %795 = vsyncpa [#allocation4 + $0x1], 1 }

</bundles_post_ra>
